<compile_context>
chip_gen: v6e
topology: v6e:2x2x1
jax: 0.10.0
libtpu: 0.0.40
codegen_flags: <defaults>
</compile_context>

<pallas_src>
import jax
import jax.numpy as jnp
from jax.experimental import pallas as pl
from jax.experimental.pallas import tpu as pltpu

LANE = 128     # vreg lane width
SUBLANE = 8    # f32 sublane count


def _round_up(v, m):
    return ((v + m - 1) // m) * m


def _mlp2_kernel(x_ref, w1_ref, w2_ref, o_ref):
    # x_ref: (TM, D); w1_ref: (D, H1p); w2_ref: (H1p, H2p); o_ref: (TM, H2p)
    h = jnp.dot(x_ref[...], w1_ref[...], preferred_element_type=jnp.float32)
    h = jnp.maximum(h, 0.0)
    o = jnp.dot(h.astype(w2_ref.dtype), w2_ref[...],
                preferred_element_type=jnp.float32)
    o_ref[...] = o.astype(o_ref.dtype)


def _mlp2_kernel_bias(x_ref, w1_ref, b1_ref, w2_ref, b2_ref, o_ref):
    # Same, with per-layer bias fused in (b*_ref: (1, H*p), zero in padding).
    h = jnp.dot(x_ref[...], w1_ref[...],
                preferred_element_type=jnp.float32) + b1_ref[...]
    h = jnp.maximum(h, 0.0)
    o = jnp.dot(h.astype(w2_ref.dtype), w2_ref[...],
                preferred_element_type=jnp.float32) + b2_ref[...]
    o_ref[...] = o.astype(o_ref.dtype)


def _choose_tile_m(B, D, H2p, resident_bytes, vmem_budget_bytes=24 << 20):
    """Pick a batch tile using physically (8,128)-padded VMEM block sizes."""
    d_lanes = _round_up(D, LANE)                      # (TM, D) block is lane-padded
    stream_bytes_per_row = (d_lanes + H2p) * 4 * 2    # x + out blocks, double-buffered
    budget = max(vmem_budget_bytes - resident_bytes, 1 << 20)
    tm_fit = budget // stream_bytes_per_row
    tm_target = max(SUBLANE, (4 << 20) // (d_lanes * 4))  # ~4 MiB of x per grid step
    tm = max(SUBLANE, min(tm_fit, tm_target, B))
    if tm >= B and B > 2 * SUBLANE:
        tm = -(-B // 2)                               # >=2 steps: use both v7x TCs
    if tm != B and tm % SUBLANE != 0:
        tm = max(SUBLANE, (tm // SUBLANE) * SUBLANE)
    return tm


def neural_net_2layer_forward(x, w1, w2, b1=None, b2=None, *, tile_m=None):
    """Pallas equivalent of NeuralNet2Layer.forward.

    x:  (B, D) float32
    w1: (H1, D) float32  -- torch layer_1.weight layout
    w2: (H2, H1) float32 -- torch layer_2.weight layout
    b1: optional (H1,), b2: optional (H2,)  (use_bias=True path)
    returns (B, H2) float32
    """
    B, D = x.shape
    H1, D_w = w1.shape
    H2, H1_w = w2.shape
    assert D == D_w and H1 == H1_w, "weight shapes inconsistent with input"
    assert (b1 is None) == (b2 is None), "pass both biases or neither"
    use_bias = b1 is not None

    # One-time layout work in the wrapper (negligible next to the x stream):
    # transpose to (K, N) contraction layout and zero-pad widths to 128 lanes.
    H1p = _round_up(H1, LANE)
    H2p = _round_up(H2, LANE)
    w1t = jnp.zeros((D, H1p), x.dtype).at[:, :H1].set(w1.T)
    w2t = jnp.zeros((H1p, H2p), x.dtype).at[:H1, :H2].set(w2.T)
    if use_bias:
        b1p = jnp.zeros((1, H1p), x.dtype).at[0, :H1].set(b1)
        b2p = jnp.zeros((1, H2p), x.dtype).at[0, :H2].set(b2)

    # Resident (constant index_map) blocks, physical (sublane,lane)-padded f32.
    resident_bytes = (
        _round_up(D, SUBLANE) * H1p + _round_up(H1p, SUBLANE) * H2p
        + ((SUBLANE * H1p + SUBLANE * H2p) if use_bias else 0)
    ) * 4
    if tile_m is None:
        tm = _choose_tile_m(B, D, H2p, resident_bytes)
    else:
        tm = min(B, tile_m)
        if tm != B and tm % SUBLANE != 0:
            tm = max(SUBLANE, (tm // SUBLANE) * SUBLANE)
    grid = (pl.cdiv(B, tm),)

    row_map = lambda i: (i, 0)       # streamed over batch tiles
    const_map = lambda i: (0, 0)     # resident: DMA'd once, reused every step

    in_specs = [
        pl.BlockSpec((tm, D), row_map),        # x
        pl.BlockSpec((D, H1p), const_map),     # W1^T (padded)
    ]
    args = [x, w1t]
    if use_bias:
        in_specs.append(pl.BlockSpec((1, H1p), const_map))
        args.append(b1p)
    in_specs.append(pl.BlockSpec((H1p, H2p), const_map))  # W2^T (padded)
    args.append(w2t)
    if use_bias:
        in_specs.append(pl.BlockSpec((1, H2p), const_map))
        args.append(b2p)

    kernel = _mlp2_kernel_bias if use_bias else _mlp2_kernel

    cost = pl.CostEstimate(
        flops=2 * B * (D * H1p + H1p * H2p),
        transcendentals=0,
        bytes_accessed=4 * (B * D + B * H2p + D * H1p + H1p * H2p
                            + ((H1p + H2p) if use_bias else 0)),
    )

    y_pad = pl.pallas_call(
        kernel,
        out_shape=jax.ShapeDtypeStruct((B, H2p), x.dtype),
        grid_spec=pltpu.PrefetchScalarGridSpec(
            num_scalar_prefetch=0,
            grid=grid,
            in_specs=in_specs,
            out_specs=pl.BlockSpec((tm, H2p), row_map),   # lane-dense output
        ),
        compiler_params=pltpu.CompilerParams(
            dimension_semantics=("parallel",),   # batch tiles are independent
            vmem_limit_bytes=48 << 20,           # headroom over 16/32 MiB defaults
        ),
        cost_estimate=cost,
    )(*args)

    return y_pad[:, :H2] if H2p != H2 else y_pad


if __name__ == "__main__":
    key = jax.random.PRNGKey(0)
    kx, kw1, kw2, kb1, kb2 = jax.random.split(key, 5)

    # Shapes consistent with the module: batch=256, num_features=32,
    # layer_sizes=(64, 8). Auto tile chooser picks tm=128 -> grid=(2,).
    B, D = 256, 32
    H1, H2 = 64, 8

    x = jax.random.normal(kx, (B, D), dtype=jnp.float32)

    # Deterministic "init" matching nn.Linear's default uniform(-1/sqrt(fan_in), ..)
    bnd1 = 1.0 / jnp.sqrt(jnp.float32(D))
    bnd2 = 1.0 / jnp.sqrt(jnp.float32(H1))
    w1 = jax.random.uniform(kw1, (H1, D), jnp.float32, -bnd1, bnd1)
    w2 = jax.random.uniform(kw2, (H2, H1), jnp.float32, -bnd2, bnd2)
    b1 = jax.random.uniform(kb1, (H1,), jnp.float32, -bnd1, bnd1)
    b2 = jax.random.uniform(kb2, (H2,), jnp.float32, -bnd2, bnd2)

    # --- use_bias=False (module default) ---
    y = neural_net_2layer_forward(x, w1, w2)
    jax.block_until_ready(y)
    y_ref = jnp.maximum(x @ w1.T, 0.0) @ w2.T
    assert y.shape == (B, H2)
    assert jnp.allclose(y, y_ref, atol=1e-5, rtol=1e-5)

    # --- use_bias=True path (fused bias adds inside the kernel) ---
    yb = neural_net_2layer_forward(x, w1, w2, b1, b2)
    jax.block_until_ready(yb)
    yb_ref = jnp.maximum(x @ w1.T + b1[None, :], 0.0) @ w2.T + b2[None, :]
    assert jnp.allclose(yb, yb_ref, atol=1e-5, rtol=1e-5)

    # Also exercise an explicit tile size with a ragged final tile.
    yt = neural_net_2layer_forward(x, w1, w2, tile_m=96)
    jax.block_until_ready(yt)
    assert jnp.allclose(yt, y_ref, atol=1e-5, rtol=1e-5)

    print("KERNEL_OK")
</pallas_src>

<mosaic_0001>
module attributes {stable_mosaic.version = 11 : i64} {
  func.func @_mlp2_kernel(%arg0: i32, %arg1: memref<128x32xf32, #tpu.memory_space<vmem>>, %arg2: memref<32x128xf32, #tpu.memory_space<vmem>>, %arg3: memref<128x128xf32, #tpu.memory_space<vmem>>, %arg4: memref<128x128xf32, #tpu.memory_space<vmem>>) attributes {dimension_semantics = [#tpu.dimension_semantics<parallel>], iteration_bounds = array<i64: 2>, scalar_prefetch = 0 : i64, scratch_operands = 0 : i64, tpu.core_type = #tpu.core_type<tc>, window_params = [{transform_indices = @transform_0, window_bounds = array<i64: 128, 32>}, {pipeline_mode = #tpu.pipeline_mode<synchronous>, transform_indices = @transform_1, window_bounds = array<i64: 32, 128>}, {pipeline_mode = #tpu.pipeline_mode<synchronous>, transform_indices = @transform_2, window_bounds = array<i64: 128, 128>}, {transform_indices = @transform_3, window_bounds = array<i64: 128, 128>}]} {
    %c0 = arith.constant 0 : index
    %c0_0 = arith.constant 0 : index
    %0 = vector.load %arg1[%c0, %c0_0] : memref<128x32xf32, #tpu.memory_space<vmem>>, vector<128x32xf32>
    %c0_1 = arith.constant 0 : index
    %c0_2 = arith.constant 0 : index
    %1 = vector.load %arg2[%c0_1, %c0_2] : memref<32x128xf32, #tpu.memory_space<vmem>>, vector<32x128xf32>
    %cst = arith.constant dense<0.000000e+00> : vector<128x128xf32>
    %2 = tpu.matmul %0, %1, %cst {dimension_numbers = #tpu.dot_dimension_numbers<[1], [0], [0], [1], [0, 0, 1, 1], [], []>} : vector<128x32xf32>, vector<32x128xf32>, vector<128x128xf32> -> vector<128x128xf32>
    %cst_3 = arith.constant 0.000000e+00 : f32
    %3 = vector.broadcast %cst_3 : f32 to vector<128x128xf32>
    %4 = arith.maximumf %2, %3 : vector<128x128xf32>
    %c0_4 = arith.constant 0 : index
    %c0_5 = arith.constant 0 : index
    %5 = vector.load %arg3[%c0_4, %c0_5] : memref<128x128xf32, #tpu.memory_space<vmem>>, vector<128x128xf32>
    %cst_6 = arith.constant dense<0.000000e+00> : vector<128x128xf32>
    %6 = tpu.matmul %4, %5, %cst_6 {dimension_numbers = #tpu.dot_dimension_numbers<[1], [0], [0], [1], [0, 0, 1, 1], [], []>} : vector<128x128xf32>, vector<128x128xf32>, vector<128x128xf32> -> vector<128x128xf32>
    %c0_7 = arith.constant 0 : index
    %c0_8 = arith.constant 0 : index
    %7 = vector.load %arg4[%c0_7, %c0_8] : memref<128x128xf32, #tpu.memory_space<vmem>>, vector<128x128xf32>
    tpu.vector_store %arg4[%c0_7, %c0_8], %6 {strides = array<i32>} : memref<128x128xf32, #tpu.memory_space<vmem>>, vector<128x128xf32>,
    return
  }
  func.func @transform_0(%arg0: i32) -> (i32, i32) {
    %c0_i32 = arith.constant 0 : i32
    %c0_i32_0 = arith.constant 0 : i32
    return %arg0, %c0_i32 : i32, i32
  }
  func.func @transform_1(%arg0: i32) -> (i32, i32) {
    %c0_i32 = arith.constant 0 : i32
    %c0_i32_0 = arith.constant 0 : i32
    %c0_i32_1 = arith.constant 0 : i32
    return %c0_i32, %c0_i32_0 : i32, i32
  }
  func.func @transform_2(%arg0: i32) -> (i32, i32) {
    %c0_i32 = arith.constant 0 : i32
    %c0_i32_0 = arith.constant 0 : i32
    %c0_i32_1 = arith.constant 0 : i32
    return %c0_i32, %c0_i32_0 : i32, i32
  }
  func.func @transform_3(%arg0: i32) -> (i32, i32) {
    %c0_i32 = arith.constant 0 : i32
    %c0_i32_0 = arith.constant 0 : i32
    return %arg0, %c0_i32 : i32, i32
  }
}

</mosaic_0001>

<bundles_post_ra>
// kernel: tpu_custom_call.1
= control target key start
LH: loop header
LB: loop body
LE: loop exit
PB: predicated region body
PF: predicated region fallthrough
CT: control target
= control target key end

     0   :  { %8 = vsyncpa [#allocation3], 0  ;;  %s1200_s0 = inlined_call_operand.vmem [shape: f32[256,32], index: 0, kind: input, shape index: {}]   ;;  %s1201_s1 = inlined_call_operand.vmem [shape: f32[32,128], index: 1, kind: input, shape index: {}]   ;;  %s1202_s2 = inlined_call_operand.vmem [shape: f32[128,128], index: 2, kind: input, shape index: {}]   ;;  %s1203_s3 = inlined_call_operand.hbm [shape: f32[256,128], index: 3, kind: output, shape index: {}]  }
   0x1   :  { %10 = vsyncpa [#allocation3 + $0x1], 0  ;;  %s982_s12 = smov 0   ;;  %s984_s13 = smov 0  }
   0x2   :  { %s986_s14 = smov 0   ;;  %s988_s15 = smov 0  }
   0x3 LB: > { %s1003_s16 = sadd.s32 4294967295, %s957_s15   ;;  %s655_s17 = sadd.s32 4294967294, %s957_s15   ;;  %s957_s15 = sphi %s988_s15, %s1209_s15   ;;  %s953_s14 = sphi %s986_s14, %s1208_s14   ;;  %s949_s13 = sphi %s984_s13, %s1207_s13   ;;  %s945_s12 = sphi %s982_s12, %s1206_s12  }
   0x4   : > { %s1007_s18 = sadd.s32 1, %s957_s15   ;;  %s91_s19 = sadd.s32 1, %s953_s14 }
   0x5   : > { %s88_s20 = ssub.s32 %s957_s15, %s1007_s18  ;;  %p101_p0 = scmp.ne.s32.totalorder %s953_s14, %s949_s13 }
   0x6   : > { %p89_p1 = scmp.eq.s32.totalorder %s88_s20, 0  ;;  %p102_p2 = scmp.eq.s32.totalorder %s1003_s16, 1 }
   0x7   : > { %p107_p3 = scmp.ne.s32.totalorder %s949_s13, %s945_s12  ;;  %p108_p4 = scmp.eq.s32.totalorder %s655_s17, 1 }
   0x8   : > { %s1018_s21 = scalar_select %p89_p1, %s953_s14, %s91_s19  }
   0x9   : > { %p1020_p5 = por %p102_p2, %p101_p0  ;;  %p1024_p6 = por %p108_p4, %p107_p3 }
   0xa   : > { %p658_p7 = scmp.ge.s32.totalorder %s957_s15, 1  ;;  %p141_p8 = scmp.lt.s32.totalorder %s957_s15, 3 }
   0xc   : > { %p142_p9 = pnand %p658_p7, %p141_p8 }
   0xd   : > { %s660_s28 = sshll.u32 (!%p142_p9), %s1003_s16, 4  ;;  %s162_s6 = sand.u32 (!%p142_p9), 1, %s949_s13  }
   0xe   : > { %145 = sbr.rel (%p142_p9) target bundleno = 463 (0x1cf), region = 32  ;;  %p166_p10 = scmp.lt.s32.totalorder (!%p142_p9), %s660_s28, 31 }
   0xf   : > { %s659_s7 = sshll.u32 (!%p142_p9), %s162_s6, 7  ;;  %s683_s9 = sshll.u32 (!%p142_p9), %s1003_s16, 11 }
  0x10   : > { %s1131_s8 = scalar_lea.vmem (!%p142_p9), [#allocation2], %s659_s7  ;;  %s1152_s19 = scalar_lea.hbm (!%p142_p9), %s1203_s3, %s683_s9 }
  0x11   : > { %s1160_s20 = scalar_lea.sflag (!%p142_p9), [#allocation3], %s162_s6  ;;  %s959_s25 = smov (!%p142_p9), [#allocation2]  }
  0x12   : > { %s901_s26 = sshll.u32 (!%p142_p9), %s959_s25, 4  ;;  %s902_s26 = int_to_ptr.vmem [resolvable:$false] %s901_s26 }
  0x13   : > { %v191_v0 = vld [vmem:[%s1201_s1 + $0x18] sm:$0xff]  ;;  %v190_v1 = vld [vmem:[%s1201_s1 + $0x10] sm:$0xff]  ;;  %v189_v3 = vld [vmem:[%s1201_s1 + $0x8] sm:$0xff]  ;;  %s1211_s28 = smov (!%p166_p10, %s660_s28), 31  ;;  %vm192_vm0 = vcmask 261120   ;;  %s903_s27 = scalar_lea.vmem %s902_s26, 4096 }
  0x14   : > { %736 = vmatprep.subr.mxu0 %v191_v0  ;;  %v417_v2 = vld [vmem:[%s1202_s2 + $0x78] sm:$0xff]  ;;  %v416_v4 = vld [vmem:[%s1202_s2 + $0x70] sm:$0xff]  ;;  %v188_v5 = vld [vmem:[%s1201_s1] sm:$0xff]  ;;  %s661_s10 = sshll.u32 %s1211_s28, 3 }
  0x15   : > { %737 = vmatpush3.msra.mxu0 %v191_v0  ;;  %824 = vmatprep.subr.mxu1 %v417_v2  ;;  %v415_v6 = vld [vmem:[%s1202_s2 + $0x68] sm:$0xff]  ;;  %s1055_s24 = scalar_lea.vmem %s1200_s0, %s661_s10  ;;  %v414_v11 = vld [vmem:[%s1202_s2 + $0x60] sm:$0xff]  ;;  %v413_v14 = vld [vmem:[%s1202_s2 + $0x58] sm:$0xff]  ;;  %s593_s10 = sshll.u32 %s1131_s8, 4  ;;  %s1154_s10 = int_to_ptr.vmem [resolvable:$true] %s593_s10 }
  0x16   : > { %738 = vmatprep.subr.mxu0 %v190_v1  ;;  %840 = vmatpush3.msra.mxu1 %v417_v2  ;;  %v172_v7 = vld [vmem:[%s1055_s24] sm:$0xff]  ;;  %v173_v8 = vld [vmem:[%s1055_s24 + $0x8] sm:$0xff]  ;;  %v174_v9 = vld [vmem:[%s1055_s24 + $0x10] sm:$0xff]  ;;  %s897_s16 = scalar_lea.vmem %s1154_s10, 2048  ;;  %p904_p0 = scmp.lt.s32.totalorder %s1154_s10, %s902_s26 }
  0x17   : > { %739 = vmatpush3.msra.mxu0 %v190_v1  ;;  %825 = vmatprep.subr.mxu1 %v416_v4  ;;  %v175_v10 = vld [vmem:[%s1055_s24 + $0x18] sm:$0xff]  ;;  %v176_v12 = vld [vmem:[%s1055_s24 + $0x20] sm:$0xff]  ;;  %v177_v13 = vld [vmem:[%s1055_s24 + $0x28] sm:$0xff]  ;;  %p898_p11 = scmp.ne.s32.totalorder %s1154_s10, %s897_s16  ;;  %p905_p1 = scmp.lt.s32.totalorder %s903_s27, %s897_s16 }
  0x18   : > { %740 = vmatprep.subr.mxu0 %v189_v3  ;;  %841 = vmatpush3.msra.mxu1 %v416_v4  ;;  %v178_v15 = vld [vmem:[%s1055_s24 + $0x30] sm:$0xff]  ;;  %v179_v17 = vld [vmem:[%s1055_s24 + $0x38] sm:$0xff]  ;;  %v411_v18 = vld [vmem:[%s1202_s2 + $0x48] sm:$0xff] }
  0x19   : > { %741 = vmatpush3.msra.mxu0 %v189_v3  ;;  %826 = vmatprep.subr.mxu1 %v415_v6  ;;  %v412_v16 = vld [vmem:[%s1202_s2 + $0x50] sm:$0xff]  ;;  %v180_v19 = vld [vmem:[%s1055_s24 + $0x40] sm:$0xff]  ;;  %v181_v21 = vld [vmem:[%s1055_s24 + $0x48] sm:$0xff]  ;;  %p899_p12 = pnand %p898_p11, %p1020_p5  ;;  %p906_p2 = por %p905_p1, %p904_p0 }
  0x1a   : > { %742 = vmatprep.subr.mxu0 %v188_v5  ;;  %842 = vmatpush3.msra.mxu1 %v415_v6  ;;  %v410_v20 = vld [vmem:[%s1202_s2 + $0x40] sm:$0xff]  ;;  %v409_v22 = vld [vmem:[%s1202_s2 + $0x38] sm:$0xff]  ;;  %v182_v23 = vld [vmem:[%s1055_s24 + $0x50] sm:$0xff] }
  0x1b   : > { %743 = vmatpush3.msra.mxu0 %v188_v5  ;;  %744 = vmatprep.mubr.msk.f32.mxu0 %vm192_vm0, %v172_v7  ;;  %v408_v24 = vld [vmem:[%s1202_s2 + $0x30] sm:$0xff]  ;;  %v183_v25 = vld [vmem:[%s1055_s24 + $0x58] sm:$0xff]  ;;  %v407_v26 = vld [vmem:[%s1202_s2 + $0x28] sm:$0xff]  ;;  %p900_p13 = pneg %p899_p12 }
  0x1c   : > { %745 = vmatmul.mubr.msk.f32.vlgmr.msra.gmra.mxu0 %vm192_vm0, %v173_v8  ;;  %768 = vmatprep.subr.mxu0 %v417_v2  ;;  %v184_v27 = vld [vmem:[%s1055_s24 + $0x60] sm:$0xff]  ;;  %v185_v29 = vld [vmem:[%s1055_s24 + $0x68] sm:$0xff]  ;;  %v405_v30 = vld [vmem:[%s1202_s2 + $0x18] sm:$0xff] }
  0x1d   : > { %747 = vmatprep.mubr.msk.f32.mxu0 %vm192_vm0, %v174_v9  ;;  %769 = vmatpush3.msra.mxu0 %v417_v2  ;;  %v406_v28 = vld [vmem:[%s1202_s2 + $0x20] sm:$0xff]  ;;  %v186_v31 = vld [vmem:[%s1055_s24 + $0x70] sm:$0xff]  ;;  %v187_v32 = vld [vmem:[%s1055_s24 + $0x78] sm:$0xff]  ;;  %p907_p3 = pnand %p906_p2, %p900_p13 }
  0x1e   : > { %770 = vmatprep.subr.mxu0 %v416_v4  ;;  %827 = vmatprep.subr.mxu1 %v414_v11  ;;  %v404_v33 = vld [vmem:[%s1202_s2 + $0x10] sm:$0xff]  ;;  %v403_v34 = vld [vmem:[%s1202_s2 + $0x8] sm:$0xff]  ;;  %v402_v35 = vld [vmem:[%s1202_s2] sm:$0xff] }
  0x1f   : > { %771 = vmatpush3.msra.mxu0 %v416_v4  ;;  %843 = vmatpush3.msra.mxu1 %v414_v11 }
  0x20   : > { %748 = vmatmul.mubr.msk.f32.gmra.mxu0 %vm192_vm0, %v175_v10  ;;  %772 = vmatprep.subr.mxu0 %v415_v6 }
  0x21   : > { %750 = vmatprep.mubr.msk.f32.mxu0 %vm192_vm0, %v176_v12  ;;  %773 = vmatpush3.msra.mxu0 %v415_v6 }
  0x22   : > { %774 = vmatprep.subr.mxu0 %v414_v11  ;;  %828 = vmatprep.subr.mxu1 %v413_v14 }
  0x23   : > { %775 = vmatpush3.msra.mxu0 %v414_v11  ;;  %844 = vmatpush3.msra.mxu1 %v413_v14 }
  0x24   : > { %751 = vmatmul.mubr.msk.f32.gmra.mxu0 %vm192_vm0, %v177_v13  ;;  %776 = vmatprep.subr.mxu0 %v413_v14 }
  0x25   : > { %753 = vmatprep.mubr.msk.f32.mxu0 %vm192_vm0, %v178_v15  ;;  %777 = vmatpush3.msra.mxu0 %v413_v14 }
  0x26   : > { %778 = vmatprep.subr.mxu0 %v412_v16  ;;  %829 = vmatprep.subr.mxu1 %v412_v16 }
  0x27   : > { %779 = vmatpush3.msra.mxu0 %v412_v16  ;;  %845 = vmatpush3.msra.mxu1 %v412_v16 }
  0x28   : > { %754 = vmatmul.mubr.msk.f32.gmra.mxu0 %vm192_vm0, %v179_v17  ;;  %780 = vmatprep.subr.mxu0 %v411_v18 }
  0x29   : > { %756 = vmatprep.mubr.msk.f32.mxu0 %vm192_vm0, %v180_v19  ;;  %781 = vmatpush3.msra.mxu0 %v411_v18 }
  0x2a   : > { %782 = vmatprep.subr.mxu0 %v410_v20  ;;  %830 = vmatprep.subr.mxu1 %v411_v18 }
  0x2b   : > { %783 = vmatpush3.msra.mxu0 %v410_v20  ;;  %846 = vmatpush3.msra.mxu1 %v411_v18 }
  0x2c   : > { %757 = vmatmul.mubr.msk.f32.gmra.mxu0 %vm192_vm0, %v181_v21  ;;  %784 = vmatprep.subr.mxu0 %v409_v22 }
  0x2d   : > { %759 = vmatprep.mubr.msk.f32.mxu0 %vm192_vm0, %v182_v23  ;;  %785 = vmatpush3.msra.mxu0 %v409_v22 }
  0x2e   : > { %786 = vmatprep.subr.mxu0 %v408_v24  ;;  %831 = vmatprep.subr.mxu1 %v410_v20 }
  0x2f   : > { %787 = vmatpush3.msra.mxu0 %v408_v24  ;;  %847 = vmatpush3.msra.mxu1 %v410_v20 }
  0x30   : > { %760 = vmatmul.mubr.msk.f32.gmra.mxu0 %vm192_vm0, %v183_v25  ;;  %788 = vmatprep.subr.mxu0 %v407_v26 }
  0x31   : > { %762 = vmatprep.mubr.msk.f32.mxu0 %vm192_vm0, %v184_v27  ;;  %789 = vmatpush3.msra.mxu0 %v407_v26 }
  0x32   : > { %790 = vmatprep.subr.mxu0 %v406_v28  ;;  %832 = vmatprep.subr.mxu1 %v409_v22 }
  0x33   : > { %791 = vmatpush3.msra.mxu0 %v406_v28  ;;  %848 = vmatpush3.msra.mxu1 %v409_v22 }
  0x34   : > { %763 = vmatmul.mubr.msk.f32.gmra.mxu0 %vm192_vm0, %v185_v29  ;;  %792 = vmatprep.subr.mxu0 %v405_v30 }
  0x35   : > { %765 = vmatprep.mubr.msk.f32.mxu0 %vm192_vm0, %v186_v31  ;;  %793 = vmatpush3.msra.mxu0 %v405_v30 }
  0x36   : > { %833 = vmatprep.subr.mxu1 %v408_v24  ;;  %794 = vmatprep.subr.mxu0 %v404_v33 }
  0x37   : > { %849 = vmatpush3.msra.mxu1 %v408_v24  ;;  %795 = vmatpush3.msra.mxu0 %v404_v33 }
  0x38   : > { %766 = vmatmul.mubr.msk.f32.gmra.mxu0 %vm192_vm0, %v187_v32  ;;  %834 = vmatprep.subr.mxu1 %v407_v26 }
  0x39   : > { %850 = vmatpush3.msra.mxu1 %v407_v26  ;;  %796 = vmatprep.subr.mxu0 %v403_v34 }
  0x3a   : > { %835 = vmatprep.subr.mxu1 %v406_v28  ;;  %797 = vmatpush3.msra.mxu0 %v403_v34 }
  0x3b   : > { %851 = vmatpush3.msra.mxu1 %v406_v28  ;;  %798 = vmatprep.subr.mxu0 %v402_v35 }
  0x3c   : > { %836 = vmatprep.subr.mxu1 %v405_v30  ;;  %799 = vmatpush3.msra.mxu0 %v402_v35 }
  0x3d   : > { %852 = vmatpush3.msra.mxu1 %v405_v30 }
  0x3e   : > { %837 = vmatprep.subr.mxu1 %v404_v33 }
  0x3f   : > { %853 = vmatpush3.msra.mxu1 %v404_v33 }
  0x40   : > { %838 = vmatprep.subr.mxu1 %v403_v34 }
  0x41   : > { %854 = vmatpush3.msra.mxu1 %v403_v34 }
  0x42   : > { %839 = vmatprep.subr.mxu1 %v402_v35 }
  0x43   : > { %855 = vmatpush3.msra.mxu1 %v402_v35 }
  0xdc   : > { %v746_v36 = vpop.f32.mrf.mxu0 }
  0xdd   : > { %v387_v39 = vmax.f32 %v746_v36, 0.0 }
  0xde   : > { %v307_v37 = vpop.f32.mrf.mxu0 }
  0xdf   : > { %v386_v38 = vmax.f32 %v307_v37, 0.0 }
  0xe0   : > { %v749_v40 = vpop.f32.mrf.mxu0 }
  0xe1   : > { %800 = vmatprep.mubr.f32.mxu0 %v386_v38  ;;  %v389_v43 = vmax.f32 %v749_v40, 0.0 }
  0xe2   : > { %v317_v41 = vpop.f32.mrf.mxu0  ;;  %801 = vmatmul.mubr.f32.vlgmr.msra.gmra.mxu0 %v387_v39 }
  0xe3   : > { %v388_v42 = vmax.f32 %v317_v41, 0.0 }
  0xe4   : > { %v752_v44 = vpop.f32.mrf.mxu0 }
  0xe5   : > { %803 = vmatprep.mubr.f32.mxu0 %v388_v42  ;;  %v391_v47 = vmax.f32 %v752_v44, 0.0 }
  0xe6   : > { %v327_v45 = vpop.f32.mrf.mxu0  ;;  %804 = vmatmul.mubr.f32.gmra.mxu0 %v389_v43 }
  0xe7   : > { %v390_v46 = vmax.f32 %v327_v45, 0.0 }
  0xe8   : > { %v755_v48 = vpop.f32.mrf.mxu0 }
  0xe9   : > { %806 = vmatprep.mubr.f32.mxu0 %v390_v46  ;;  %v393_v51 = vmax.f32 %v755_v48, 0.0 }
  0xea   : > { %v337_v49 = vpop.f32.mrf.mxu0  ;;  %807 = vmatmul.mubr.f32.gmra.mxu0 %v391_v47 }
  0xeb   : > { %v392_v50 = vmax.f32 %v337_v49, 0.0 }
  0xec   : > { %v758_v52 = vpop.f32.mrf.mxu0 }
  0xed   : > { %809 = vmatprep.mubr.f32.mxu1 %v392_v50  ;;  %v395_v55 = vmax.f32 %v758_v52, 0.0 }
  0xee   : > { %v347_v53 = vpop.f32.mrf.mxu0  ;;  %810 = vmatmul.mubr.f32.vlgmr.msra.gmra.mxu1 %v393_v51 }
  0xef   : > { %v394_v54 = vmax.f32 %v347_v53, 0.0 }
  0xf0   : > { %v761_v56 = vpop.f32.mrf.mxu0 }
  0xf1   : > { %812 = vmatprep.mubr.f32.mxu1 %v394_v54  ;;  %v397_v59 = vmax.f32 %v761_v56, 0.0 }
  0xf2   : > { %v357_v57 = vpop.f32.mrf.mxu0  ;;  %813 = vmatmul.mubr.f32.gmra.mxu1 %v395_v55 }
  0xf3   : > { %v396_v58 = vmax.f32 %v357_v57, 0.0 }
  0xf4   : > { %v764_v60 = vpop.f32.mrf.mxu0 }
  0xf5   : > { %815 = vmatprep.mubr.f32.mxu1 %v396_v58  ;;  %v399_v63 = vmax.f32 %v764_v60, 0.0 }
  0xf6   : > { %v367_v61 = vpop.f32.mrf.mxu0  ;;  %816 = vmatmul.mubr.f32.gmra.mxu1 %v397_v59 }
  0xf7   : > { %v398_v62 = vmax.f32 %v367_v61, 0.0 }
  0xf8   : > { %v767_v0 = vpop.f32.mrf.mxu0 }
  0xf9   : > { %818 = vmatprep.mubr.f32.mxu1 %v398_v62  ;;  %v401_v3 = vmax.f32 %v767_v0, 0.0 }
  0xfa   : > { %v377_v1 = vpop.f32.mrf.mxu0  ;;  %819 = vmatmul.mubr.f32.gmra.mxu1 %v399_v63 }
  0xfb   : > { %v400_v2 = vmax.f32 %v377_v1, 0.0 }
  0xfd   : > { %821 = vmatprep.mubr.f32.mxu1 %v400_v2 }
  0xfe   : > { %822 = vmatmul.mubr.f32.gmra.mxu1 %v401_v3 }
 0x1a2   : > { %v802_v4 = vpop.f32.mrf.mxu0 }
 0x1a3   : > { %564 = vst [vmem:[%s1131_s8 + $0x8] sm:$0xff] %v802_v4 }
 0x1a4   : > { %v484_v5 = vpop.f32.mrf.mxu0 }
 0x1a5   : > { %563 = vst [vmem:[%s1131_s8] sm:$0xff] %v484_v5 }
 0x1a6   : > { %v805_v6 = vpop.f32.mrf.mxu0 }
 0x1a7   : > { %566 = vst [vmem:[%s1131_s8 + $0x18] sm:$0xff] %v805_v6 }
 0x1a8   : > { %v494_v7 = vpop.f32.mrf.mxu0 }
 0x1a9   : > { %565 = vst [vmem:[%s1131_s8 + $0x10] sm:$0xff] %v494_v7 }
 0x1aa   : > { %v808_v8 = vpop.f32.mrf.mxu0 }
 0x1ab   : > { %568 = vst [vmem:[%s1131_s8 + $0x28] sm:$0xff] %v808_v8 }
 0x1ac   : > { %v504_v9 = vpop.f32.mrf.mxu0 }
 0x1ad   : > { %567 = vst [vmem:[%s1131_s8 + $0x20] sm:$0xff] %v504_v9 }
 0x1ae   : > { %v811_v10 = vpop.f32.mrf.mxu1 }
 0x1af   : > { %570 = vst [vmem:[%s1131_s8 + $0x38] sm:$0xff] %v811_v10 }
 0x1b0   : > { %v514_v11 = vpop.f32.mrf.mxu1 }
 0x1b1   : > { %569 = vst [vmem:[%s1131_s8 + $0x30] sm:$0xff] %v514_v11 }
 0x1b2   : > { %v814_v12 = vpop.f32.mrf.mxu1 }
 0x1b3   : > { %572 = vst [vmem:[%s1131_s8 + $0x48] sm:$0xff] %v814_v12 }
 0x1b4   : > { %v524_v13 = vpop.f32.mrf.mxu1 }
 0x1b5   : > { %571 = vst [vmem:[%s1131_s8 + $0x40] sm:$0xff] %v524_v13 }
 0x1b6   : > { %v817_v14 = vpop.f32.mrf.mxu1 }
 0x1b7   : > { %574 = vst [vmem:[%s1131_s8 + $0x58] sm:$0xff] %v817_v14 }
 0x1b8   : > { %v534_v15 = vpop.f32.mrf.mxu1 }
 0x1b9   : > { %573 = vst [vmem:[%s1131_s8 + $0x50] sm:$0xff] %v534_v15 }
 0x1ba   : > { %v820_v16 = vpop.f32.mrf.mxu1 }
 0x1bb   : > { %576 = vst [vmem:[%s1131_s8 + $0x68] sm:$0xff] %v820_v16 }
 0x1bc   : > { %v544_v17 = vpop.f32.mrf.mxu1 }
 0x1bd   : > { %575 = vst [vmem:[%s1131_s8 + $0x60] sm:$0xff] %v544_v17 }
 0x1be   : > { %v823_v18 = vpop.f32.mrf.mxu1 }
 0x1bf   : > { %578 = vst [vmem:[%s1131_s8 + $0x78] sm:$0xff] %v823_v18 }
 0x1c0   : > { %v554_v19 = vpop.f32.mrf.mxu1 }
 0x1c1   : > { %577 = vst [vmem:[%s1131_s8 + $0x70] sm:$0xff] %v554_v19 }
 0x1c2   : > { %910 = shalt.err (!%p907_p3)
}
 0x1c3   : > { %s911_s28 = scalar_lea.hbm %s1152_s19, 2048  ;;  %s915_s24 = scalar_lea.hbm %s1203_s3, 4096 }
 0x1c4   : > { %p912_p4 = scmp.ne.s32.totalorder %s1152_s19, %s911_s28  ;;  %p916_p9 = scmp.lt.s32.totalorder %s1152_s19, %s1203_s3 }
 0x1c5   : > { %p917_p10 = scmp.lt.s32.totalorder %s915_s24, %s911_s28 }
 0x1c6   : > { %p913_p7 = pnand %p912_p4, %p1020_p5 }
 0x1c7   : > { %p918_p11 = por %p917_p10, %p916_p9 }
 0x1c8   : > { %p914_p8 = pneg %p913_p7 }
 0x1ca   : > { %p919_p12 = pnand %p918_p11, %p914_p8 }
 0x1cc   : > { %922 = shalt.err (!%p919_p12)
}
 0x1cd   : > { %s960_s6 = smov 128   ;;  %s961_s7 = smov 8  }
 0x1ce   : > { %856 = dma.vmem_to_hbm [thread:$0]  (%p1020_p5), %s1154_s10, 2048, %s1152_s19, %s1160_s20, %s960_s6, %s960_s6, %s961_s7  }
 0x1cf PF: > { %p862_p13 = scmp.ge.s32.totalorder %s957_s15, 2  ;;  %s608_s8 = sand.u32 1, %s945_s12  }
 0x1d0   : > { %s609_s9 = scalar_lea.sflag [#allocation3], %s608_s8 }
 0x1d1   : > { %p859_p0 = pnand %p862_p13, %p1024_p6 }
 0x1d3   : > { %p860_p1 = pneg %p859_p0 }
 0x1d5   : > { %940 = dma.done.wait (%p860_p1), %s609_s9, 2048  }
 0x1d6   : > { %942 = vsyncadd (%p860_p1), %s609_s9, 4294965248  ;;  %p13_p2 = scmp.ge.s32.totalorder %s1007_s18, 4   ;;  %s1206_s12 = smov %s949_s13 }
 0x1d7   : > { %s1207_s13 = smov %s953_s14  ;;  %s1208_s14 = smov %s1018_s21 }
 0x1d8   : > { %s1209_s15 = smov %s1007_s18  ;;  %15 = sbr.rel (!%p13_p2) target bundleno = 3 (0x3), region = 67 }
 0x1dd   :  { %614 = vsyncpa [#allocation3], 1 }
 0x1de   :  { %616 = vsyncpa [#allocation3 + $0x1], 1 }

</bundles_post_ra>
